<compile_context>
chip_gen: v7x
topology: tpu7x:2x2x1
jax: 0.10.0
libtpu: 0.0.40
codegen_flags: <defaults>
</compile_context>

<pallas_src>
import jax
import jax.numpy as jnp
import numpy as np
from jax.experimental import pallas as pl
from jax.experimental.pallas import tpu as pltpu


def _round_up(x: int, m: int) -> int:
    return ((x + m - 1) // m) * m


# Explicit, generation-aware VMEM budgeting:
#   physical VMEM: v5e/v6e 128 MiB, v7x 64 MiB per TensorCore; scoped defaults 16/32/32 MiB.
#   48 MiB is safely below v7x physical and above every scoped default; ~36 MiB of it is the
#   budget for the double-buffered z / z_out / ldj blocks (rest = params + compiler headroom).
_VMEM_LIMIT_BYTES = 48 << 20
_TILE_BUDGET_BYTES = 36 << 20


def planar_forward_kernel(b_ref, wu_ref, z_ref, w_ref, u_hat_ref, z_out_ref, ldj_ref):
    """One (TB, D) batch tile of the planar-flow forward pass."""
    z = z_ref[...].astype(jnp.float32)   # [TB, D] (bf16 input upcast in VMEM, f32 compute)
    w = w_ref[...]                        # [1, D]  f32 (broadcast over batch)
    u_hat = u_hat_ref[...]                # [1, D]  f32 (precomputed in wrapper)
    b = b_ref[0]                          # scalar  f32 (SMEM)
    wu = wu_ref[0]                        # scalar  f32 (SMEM) = sum(w * u_hat)

    # lin = w . z + b  -> [TB, 1]   (VPU mul + XLU row-reduce)
    lin = jnp.sum(w * z, axis=1, keepdims=True) + b

    # single EUP transcendental per row
    h = jnp.tanh(lin)                                     # [TB, 1]

    # z_ = z + u_hat * tanh(lin), stored back in the caller's dtype
    z_out_ref[...] = (z + u_hat * h).astype(z_out_ref.dtype)

    # log|det J| = log|1 + wu * tanh'(lin)|,  tanh'(x) = 1 - tanh(x)^2 (reuses h)
    hp = 1.0 - h * h
    ldj_col = jnp.log(jnp.abs(1.0 + wu * hp))             # [TB, 1]
    # lane-dense store: transpose the per-row column to a [1, TB] row (XLU)
    ldj_ref[...] = jnp.transpose(ldj_col, (1, 0))


def planar_forward(z, w, u, b, *, tb=None):
    """Planar flow forward pass.

    Args:
      z: [B, D] latent batch (f32 or bf16; streamed in its own dtype).
      w, u: [1, D] (or [D]) planar-flow parameters.
      b: scalar bias, shape (1,).
      tb: optional batch tile size override.

    Returns:
      (z_out [B, D] in z.dtype, log_det_jacobian [B] f32).
    """
    B, D = z.shape
    w = jnp.asarray(w, jnp.float32).reshape(1, D)
    u = jnp.asarray(u, jnp.float32).reshape(1, D)
    b = jnp.asarray(b, jnp.float32).reshape(1)

    # --- hoisted batch-invariant parameter math (tiny, runs once in XLA) --------------
    inner = jnp.sum(w * u)
    # stable softplus (log(1+exp(x)) overflows f32 for x > ~88)
    u_hat = u + (jax.nn.softplus(inner) - 1.0 - inner) * w / jnp.sum(w * w)
    wu = jnp.sum(w * u_hat).reshape(1)

    # --- D-aware, VMEM-budget-driven batch tiling --------------------------------------
    d_lanes = _round_up(D, 128)                  # lane padding of the minor dim in VMEM
    isz = z.dtype.itemsize                       # z and z_out streamed in the input dtype
    # per batch-row VMEM: double-buffered z + z_out blocks + double-buffered (8, tb) ldj row
    bytes_per_row = 2 * d_lanes * isz + 2 * d_lanes * isz + 2 * 8 * 4
    if tb is None:
        tb_budget = max(128, (_TILE_BUDGET_BYTES // bytes_per_row) // 128 * 128)
        # keep >= ~4 grid steps on large batches so both v7x TensorCores stay busy
        tb = min(tb_budget, _round_up(pl.cdiv(B, 4), 128))
    tb = _round_up(max(int(tb), 8), 8)
    if tb >= _round_up(B, 8):
        tb = _round_up(B, 8)                     # single tile covering the whole batch
    else:
        tb = _round_up(tb, 128)                  # multi-tile: 128-aligned lane-dense ldj blocks
    grid_n = pl.cdiv(B, tb)                      # ragged last tile handled by block clipping

    z_out, ldj = pl.pallas_call(
        planar_forward_kernel,
        out_shape=(
            jax.ShapeDtypeStruct((B, D), z.dtype),
            jax.ShapeDtypeStruct((1, grid_n * tb), jnp.float32),
        ),
        grid=(grid_n,),
        in_specs=[
            pl.BlockSpec(memory_space=pltpu.MemorySpace.SMEM),    # b   (scalar)
            pl.BlockSpec(memory_space=pltpu.MemorySpace.SMEM),    # wu  (scalar)
            pl.BlockSpec((tb, D), lambda i: (i, 0)),              # z   (tiled over B)
            pl.BlockSpec((1, D), lambda i: (0, 0)),               # w   (broadcast)
            pl.BlockSpec((1, D), lambda i: (0, 0)),               # u_hat (broadcast)
        ],
        out_specs=(
            pl.BlockSpec((tb, D), lambda i: (i, 0)),              # z_out
            pl.BlockSpec((1, tb), lambda i: (0, i)),              # ldj (lane-dense row)
        ),
        compiler_params=pltpu.CompilerParams(
            # batch axis is embarrassingly parallel -> shards across v7x's 2 TensorCores
            dimension_semantics=("parallel",),
            vmem_limit_bytes=_VMEM_LIMIT_BYTES,
        ),
    )(b, wu, z, w, u_hat)

    return z_out, ldj[0, :B]


def planar_forward_ref(z, w, u, b):
    """Pure-JAX reference mirroring the PyTorch PlanarLayer.forward (act='tanh')."""
    lin = jnp.sum(w * z, axis=1, keepdims=True) + b[0]
    inner = jnp.sum(w * u)
    u_hat = u + (jax.nn.softplus(inner) - 1.0 - inner) * w / jnp.sum(w * w)
    z_ = z + u_hat * jnp.tanh(lin)
    hp = 1.0 / jnp.cosh(lin.reshape(-1)) ** 2
    ldj = jnp.log(jnp.abs(1.0 + jnp.sum(w * u_hat) * hp))
    return z_, ldj


if __name__ == "__main__":
    key = jax.random.PRNGKey(0)
    k_z, k_u, k_w, k_b, k_z2 = jax.random.split(key, 5)

    B, D = 8, 32  # latent shape = (D,), batch of B latents

    # Deterministic parameter init matching PlanarLayer.__init__:
    lim_w = float(np.sqrt(2.0 / D))
    lim_u = float(np.sqrt(2.0))
    u = jax.random.uniform(k_u, (1, D), jnp.float32, -lim_u, lim_u)
    w = jax.random.uniform(k_w, (1, D), jnp.float32, -lim_w, lim_w)
    b = jax.random.uniform(k_b, (1,), jnp.float32, -0.01, 0.01)

    # --- small case: single tile, block == array --------------------------------------
    z = jax.random.normal(k_z, (B, D), jnp.float32)
    z_out, ldj = planar_forward(z, w, u, b)
    jax.block_until_ready((z_out, ldj))

    z_ref, ldj_ref = planar_forward_ref(z, w, u, b)
    assert z_out.shape == (B, D) and ldj.shape == (B,)
    np.testing.assert_allclose(np.asarray(z_out), np.asarray(z_ref), rtol=1e-5, atol=1e-5)
    np.testing.assert_allclose(np.asarray(ldj), np.asarray(ldj_ref), rtol=1e-5, atol=1e-5)

    # --- ragged case: multi-tile grid, no wrapper pad, lane-dense ldj across blocks ----
    B2 = 300
    z2 = jax.random.normal(k_z2, (B2, D), jnp.float32)
    z2_out, ldj2 = planar_forward(z2, w, u, b, tb=128)    # grid of 3 tiles, last one ragged
    jax.block_until_ready((z2_out, ldj2))

    z2_ref, ldj2_ref = planar_forward_ref(z2, w, u, b)
    assert z2_out.shape == (B2, D) and ldj2.shape == (B2,)
    np.testing.assert_allclose(np.asarray(z2_out), np.asarray(z2_ref), rtol=1e-5, atol=1e-5)
    np.testing.assert_allclose(np.asarray(ldj2), np.asarray(ldj2_ref), rtol=1e-5, atol=1e-5)

    # --- bf16 streaming case: no wrapper astype, in-kernel upcast, bf16 z_out ----------
    z3 = z2.astype(jnp.bfloat16)
    z3_out, ldj3 = planar_forward(z3, w, u, b)            # default (budget-derived) tb
    jax.block_until_ready((z3_out, ldj3))
    assert z3_out.dtype == jnp.bfloat16
    z3_ref, ldj3_ref = planar_forward_ref(z3.astype(jnp.float32), w, u, b)
    np.testing.assert_allclose(np.asarray(z3_out, dtype=np.float32), np.asarray(z3_ref),
                               rtol=2e-2, atol=2e-2)
    np.testing.assert_allclose(np.asarray(ldj3), np.asarray(ldj3_ref), rtol=2e-2, atol=2e-2)

    print("KERNEL_OK")
</pallas_src>

<mosaic_0001>
module attributes {stable_mosaic.version = 11 : i64} {
  func.func @planar_forward_kernel(%arg0: i32, %arg1: memref<1xf32, #tpu.memory_space<smem>>, %arg2: memref<1xf32, #tpu.memory_space<smem>>, %arg3: memref<8x32xf32, #tpu.memory_space<vmem>>, %arg4: memref<1x32xf32, #tpu.memory_space<vmem>>, %arg5: memref<1x32xf32, #tpu.memory_space<vmem>>, %arg6: memref<8x32xf32, #tpu.memory_space<vmem>>, %arg7: memref<1x8xf32, #tpu.memory_space<vmem>>) attributes {dimension_semantics = [#tpu.dimension_semantics<parallel>], iteration_bounds = array<i64: 1>, scalar_prefetch = 0 : i64, scratch_operands = 0 : i64, tpu.core_type = #tpu.core_type<tc>, window_params = [{transform_indices = @transform_0, window_bounds = array<i64: 1>}, {transform_indices = @transform_1, window_bounds = array<i64: 1>}, {transform_indices = @transform_2, window_bounds = array<i64: 8, 32>}, {pipeline_mode = #tpu.pipeline_mode<synchronous>, transform_indices = @transform_3, window_bounds = array<i64: 1, 32>}, {pipeline_mode = #tpu.pipeline_mode<synchronous>, transform_indices = @transform_4, window_bounds = array<i64: 1, 32>}, {transform_indices = @transform_5, window_bounds = array<i64: 8, 32>}, {transform_indices = @transform_6, window_bounds = array<i64: 1, 8>}]} {
    %c0 = arith.constant 0 : index
    %c0_0 = arith.constant 0 : index
    %0 = vector.load %arg3[%c0, %c0_0] : memref<8x32xf32, #tpu.memory_space<vmem>>, vector<8x32xf32>
    %c0_1 = arith.constant 0 : index
    %c0_2 = arith.constant 0 : index
    %1 = vector.load %arg4[%c0_1, %c0_2] : memref<1x32xf32, #tpu.memory_space<vmem>>, vector<1x32xf32>
    %c0_3 = arith.constant 0 : index
    %c0_4 = arith.constant 0 : index
    %2 = vector.load %arg5[%c0_3, %c0_4] : memref<1x32xf32, #tpu.memory_space<vmem>>, vector<1x32xf32>
    %c0_5 = arith.constant 0 : index
    %3 = memref.load %arg1[%c0_5] : memref<1xf32, #tpu.memory_space<smem>>
    %c0_6 = arith.constant 0 : index
    %4 = memref.load %arg2[%c0_6] : memref<1xf32, #tpu.memory_space<smem>>
    %5 = vector.broadcast %1 : vector<1x32xf32> to vector<8x32xf32>
    %6 = arith.mulf %5, %0 : vector<8x32xf32>
    %cst = arith.constant dense<0.000000e+00> : vector<8xf32>
    %7 = vector.multi_reduction <add>, %6, %cst [1] : vector<8x32xf32> to vector<8xf32>
    %8 = vector.shape_cast %7 : vector<8xf32> to vector<8x1xf32>
    %9 = vector.broadcast %3 : f32 to vector<8x1xf32>
    %10 = arith.addf %8, %9 : vector<8x1xf32>
    %11 = math.tanh %10 : vector<8x1xf32>
    %12 = vector.broadcast %2 : vector<1x32xf32> to vector<8x32xf32>
    %13 = vector.broadcast %11 : vector<8x1xf32> to vector<8x32xf32>
    %14 = arith.mulf %12, %13 : vector<8x32xf32>
    %15 = arith.addf %0, %14 : vector<8x32xf32>
    %c0_7 = arith.constant 0 : index
    %c0_8 = arith.constant 0 : index
    %16 = vector.load %arg6[%c0_7, %c0_8] : memref<8x32xf32, #tpu.memory_space<vmem>>, vector<8x32xf32>
    tpu.vector_store %arg6[%c0_7, %c0_8], %15 {strides = array<i32>} : memref<8x32xf32, #tpu.memory_space<vmem>>, vector<8x32xf32>,
    %17 = arith.mulf %11, %11 : vector<8x1xf32>
    %cst_9 = arith.constant 1.000000e+00 : f32
    %18 = vector.broadcast %cst_9 : f32 to vector<8x1xf32>
    %19 = arith.subf %18, %17 : vector<8x1xf32>
    %20 = vector.broadcast %4 : f32 to vector<8x1xf32>
    %21 = arith.mulf %20, %19 : vector<8x1xf32>
    %cst_10 = arith.constant 1.000000e+00 : f32
    %22 = vector.broadcast %cst_10 : f32 to vector<8x1xf32>
    %23 = arith.addf %22, %21 : vector<8x1xf32>
    %24 = math.absf %23 : vector<8x1xf32>
    %25 = math.log %24 : vector<8x1xf32>
    %26 = tpu.transpose %25, [1, 0] : vector<8x1xf32> -> vector<1x8xf32>
    %c0_11 = arith.constant 0 : index
    %c0_12 = arith.constant 0 : index
    %27 = vector.load %arg7[%c0_11, %c0_12] : memref<1x8xf32, #tpu.memory_space<vmem>>, vector<1x8xf32>
    tpu.vector_store %arg7[%c0_11, %c0_12], %26 {strides = array<i32>} : memref<1x8xf32, #tpu.memory_space<vmem>>, vector<1x8xf32>,
    return
  }
  func.func @transform_0(%arg0: i32) -> i32 {
    %c0_i32 = arith.constant 0 : i32
    %c0_i32_0 = arith.constant 0 : i32
    return %c0_i32 : i32
  }
  func.func @transform_1(%arg0: i32) -> i32 {
    %c0_i32 = arith.constant 0 : i32
    %c0_i32_0 = arith.constant 0 : i32
    return %c0_i32 : i32
  }
  func.func @transform_2(%arg0: i32) -> (i32, i32) {
    %c0_i32 = arith.constant 0 : i32
    %c0_i32_0 = arith.constant 0 : i32
    return %arg0, %c0_i32 : i32, i32
  }
  func.func @transform_3(%arg0: i32) -> (i32, i32) {
    %c0_i32 = arith.constant 0 : i32
    %c0_i32_0 = arith.constant 0 : i32
    %c0_i32_1 = arith.constant 0 : i32
    return %c0_i32, %c0_i32_0 : i32, i32
  }
  func.func @transform_4(%arg0: i32) -> (i32, i32) {
    %c0_i32 = arith.constant 0 : i32
    %c0_i32_0 = arith.constant 0 : i32
    %c0_i32_1 = arith.constant 0 : i32
    return %c0_i32, %c0_i32_0 : i32, i32
  }
  func.func @transform_5(%arg0: i32) -> (i32, i32) {
    %c0_i32 = arith.constant 0 : i32
    %c0_i32_0 = arith.constant 0 : i32
    return %arg0, %c0_i32 : i32, i32
  }
  func.func @transform_6(%arg0: i32) -> (i32, i32) {
    %c0_i32 = arith.constant 0 : i32
    %c0_i32_0 = arith.constant 0 : i32
    return %c0_i32, %arg0 : i32, i32
  }
}

</mosaic_0001>

<bundles_post_ra>
// kernel: tpu_custom_call.1
= control target key start
LH: loop header
LB: loop body
LE: loop exit
PB: predicated region body
PF: predicated region fallthrough
CT: control target
= control target key end

     0   :  { %14 = vsyncpa [#allocation5], 0  ;;  %s307_s0 = inlined_call_operand.<no memory space> [shape: f32[1], index: 0, kind: input, shape index: {}]   ;;  %s308_s1 = inlined_call_operand.<no memory space> [shape: f32[1], index: 1, kind: input, shape index: {}]   ;;  %s309_s2 = inlined_call_operand.hbm [shape: f32[8,32], index: 2, kind: input, shape index: {}]   ;;  %s310_s3 = inlined_call_operand.vmem [shape: f32[1,32], index: 3, kind: input, shape index: {}]   ;;  %s311_s4 = inlined_call_operand.vmem [shape: f32[1,32], index: 4, kind: input, shape index: {}]   ;;  %s312_s5 = inlined_call_operand.hbm [shape: f32[8,32], index: 5, kind: output, shape index: {0}]   ;;  %s313_s6 = inlined_call_operand.hbm [shape: f32[1,8], index: 6, kind: output, shape index: {1}]  }
   0x1   :  { %15 = vsyncpa [#allocation6], 0 }
   0x2   :  { %16 = vsyncpa [#allocation9], 0  ;;  %s219_s21 = smov [#allocation4]   ;;  %s147_s25 = scalar_lea.hbm %s309_s2, 128 }
   0x3   :  { %s27_s22 = sshll.u32 %s219_s21, 4  ;;  %p148_p0 = scmp.ne.s32.totalorder %s309_s2, %s147_s25  ;;  %s28_s22 = int_to_ptr.vmem [resolvable:$true] %s27_s22 }
   0x4   :  { %p151_p1 = scmp.lt.u32.totalorder %s147_s25, %s309_s2 }
   0x6   :  { %p153_p2 = pnand %p151_p1, %p148_p0 }
   0x8   :  { %156 = shalt.err (!%p153_p2)
}
   0x9   :  { %s157_s30 = scalar_lea.vmem %s28_s22, 128  ;;  %p162_p4 = scmp.lt.s32.totalorder %s28_s22, %s28_s22 }
   0xa   :  { %p158_p3 = scmp.ne.s32.totalorder %s28_s22, %s157_s30  ;;  %p163_p5 = scmp.lt.s32.totalorder %s157_s30, %s157_s30 }
   0xc   :  { %p164_p6 = por %p163_p5, %p162_p4 }
   0xe   :  { %p165_p7 = pnand %p164_p6, %p158_p3 }
  0x10   :  { %168 = shalt.err (!%p165_p7)
}
  0x11   :  { %30 = dma.hbm_to_vmem [thread:$0]  %s309_s2, 128, %s28_s22, [#allocation5]  }
  0x12   :  { %213 = dma.done.wait [#allocation5], 128  }
  0x13   :  { %214 = vsyncadd [#allocation5], 4294967168  ;;  %v38_v0 = vld [vmem:[#allocation4] sm:$0xff]  ;;  %vm50_vm0 = vcmask 261120   ;;  %v54_v4 = vstv %s307_s0  ;;  %v68_v11 = vstv %s308_s1  ;;  %s220_s0 = smov [#allocation7]  }
  0x14   :  { %v137_v1 = vld [vmem:[%s310_s3] ss:$0 sm:$0xff] }
  0x15   :  { %v49_v2 = vmul.f32 %v137_v1, %v38_v0  ;;  %v138_v7 = vld [vmem:[%s311_s4] ss:$0 sm:$0xff]  ;;  %s114_s4 = sshll.u32 %s220_s0, 4  ;;  %s115_s4 = int_to_ptr.vmem [resolvable:$true] %s114_s4 }
  0x16   :  { %s169_s15 = scalar_lea.vmem %s115_s4, 128  ;;  %p174_p9 = scmp.lt.s32.totalorder %s115_s4, %s115_s4 }
  0x17   :  { %v51_v3 = vsel %vm50_vm0, %v49_v2, 0.0  ;;  %p170_p8 = scmp.ne.s32.totalorder %s115_s4, %s169_s15  ;;  %p175_p10 = scmp.lt.s32.totalorder %s169_s15, %s169_s15 }
  0x18   :  { %52 = vadd.xlane.f32.xlu0 %v51_v3 }
  0x19   :  { %p176_p11 = por %p175_p10, %p174_p9 }
  0x1b   :  { %p177_p12 = pnand %p176_p11, %p170_p8 }
  0xa5   :  { %v53_v5 = vpop.xlane.xlu0 %52 }
  0xa6   :  { %v55_v6 = vadd.f32 %v54_v4, %v53_v5 }
  0xa8   :  { %143 = vtanh.f32 %v55_v6 }
  0xb2   :  { %v144_v8 = vpop.eup %143 }
  0xb3   :  { %v66_v9 = vmul.f32 %v144_v8, %v144_v8  ;;  %v63_v10 = vmul.f32 %v144_v8, %v138_v7 }
  0xb5   :  { %v67_v12 = vsub.f32 1.0, %v66_v9  ;;  %v64_v13 = vadd.f32 %v63_v10, %v38_v0 }
  0xb7   :  { %v69_v14 = vmul.f32 %v68_v11, %v67_v12  ;;  %65 = vst.msk [vmem:[#allocation7] sm:$0xff] %vm50_vm0, %v64_v13 }
  0xb9   :  { %v70_v15 = vadd.f32 1.0, %v69_v14 }
  0xbb   :  { %v71_v16 = vand.u32 2147483647, %v70_v15 }
  0xbd   :  { %145 = vlog2.f32 %v71_v16 }
  0xc7   :  { %v146_v17 = vpop.eup %145 }
  0xc8   :  { %v73_v18 = vmul.f32 0.6931472, %v146_v17 }
  0xca   :  { %74 = vxpose.xlu0.b32.start.end [1/1] (short) (narrow) %v73_v18, 8 }
  0xcb   :  { %180 = shalt.err (!%p177_p12)
}
  0xcc   :  { %s181_s17 = scalar_lea.hbm %s312_s5, 128 }
  0xcd   :  { %p182_p13 = scmp.ne.s32.totalorder %s312_s5, %s181_s17  ;;  %p185_p0 = scmp.lt.u32.totalorder %s181_s17, %s312_s5 }
  0xcf   :  { %p187_p1 = pnand %p185_p0, %p182_p13 }
  0xd1   :  { %190 = shalt.err (!%p187_p1)
}
  0xd2   :  { %117 = dma.vmem_to_hbm [thread:$0]  %s115_s4, 128, %s312_s5, [#allocation6]   ;;  %vm106_vm1 = vcmask 57344  }
  0xd3   :  { %s221_s24 = smov [#allocation8]  }
  0xd4   :  { %s124_s25 = sshll.u32 %s221_s24, 4  ;;  %s125_s25 = int_to_ptr.vmem [resolvable:$true] %s124_s25 }
  0xd5   :  { %s191_s26 = scalar_lea.vmem %s125_s25, 16  ;;  %s195_s27 = scalar_lea.vmem %s125_s25, 32 }
  0xd6   :  { %p192_p2 = scmp.ne.s32.totalorder %s125_s25, %s191_s26  ;;  %p196_p3 = scmp.lt.s32.totalorder %s125_s25, %s125_s25 }
  0xd7   :  { %p197_p4 = scmp.lt.s32.totalorder %s195_s27, %s191_s26 }
  0xd9   :  { %p198_p5 = por %p197_p4, %p196_p3 }
  0xdb   :  { %p199_p6 = pnand %p198_p5, %p192_p2 }
 0x14a   :  { %v90_v19 = vpop.trf.xlu0 }
 0x14b   :  { %107 = vst.msk [vmem:[#allocation8] sm:$0x1] %vm106_vm1, %v90_v19 }
 0x14c   :  { %202 = shalt.err (!%p199_p6)
}
 0x14d   :  { %s203_s30 = scalar_lea.hbm %s313_s6, 16 }
 0x14e   :  { %p204_p7 = scmp.ne.s32.totalorder %s313_s6, %s203_s30  ;;  %p207_p8 = scmp.lt.u32.totalorder %s203_s30, %s313_s6 }
 0x150   :  { %p209_p9 = pnand %p207_p8, %p204_p7 }
 0x152   :  { %212 = shalt.err (!%p209_p9)
}
 0x153   :  { %127 = dma.vmem_to_hbm [thread:$0]  %s125_s25, 16, %s313_s6, [#allocation9]  }
 0x154   :  { %215 = dma.done.wait [#allocation6], 128  }
 0x155   :  { %216 = vsyncadd [#allocation6], 4294967168 }
 0x156   :  { %217 = dma.done.wait [#allocation9], 16  }
 0x157   :  { %218 = vsyncadd [#allocation9], 4294967280 }
 0x158   :  { %134 = vsyncpa [#allocation5], 1 }
 0x159   :  { %135 = vsyncpa [#allocation6], 1 }
 0x15a   :  { %136 = vsyncpa [#allocation9], 1 }

</bundles_post_ra>
